<compile_context>
chip_gen: v5e
topology: v5e:2x2
jax: 0.10.0
libtpu: 0.0.40
codegen_flags: <defaults>
</compile_context>

<pallas_src>
import jax
import jax.numpy as jnp
from jax.experimental import pallas as pl
from jax.experimental.pallas import tpu as pltpu


def _round_up(x, m):
    return ((x + m - 1) // m) * m


def _cdiv(a, b):
    return -(-a // b)


def mlp_block_kernel(x_ref, w1_ref, b1_ref, w2_ref, b2_ref, w3_ref, b3_ref,
                     out_ref):
    # Activations cast to bf16 only for the MXU; accumulation + elementwise
    # math in f32 (v5e has no bf16 VPU/EUP). Biases broadcast over the batch.
    x = x_ref[...].astype(jnp.bfloat16)

    # Layer 1: Linear(F, 256) + ReLU
    h1 = jnp.dot(x, w1_ref[...], preferred_element_type=jnp.float32)
    h1 = jnp.maximum(h1 + b1_ref[...], 0.0)

    # Layer 2: Linear(256, 128) + ReLU
    h2 = jnp.dot(h1.astype(jnp.bfloat16), w2_ref[...],
                 preferred_element_type=jnp.float32)
    h2 = jnp.maximum(h2 + b2_ref[...], 0.0)

    # Layer 3: Linear(128, output_dim) + Softmax(dim=-1)
    logits = jnp.dot(h2.astype(jnp.bfloat16), w3_ref[...],
                     preferred_element_type=jnp.float32)
    logits = logits + b3_ref[...]

    # Numerically-stable softmax along the last axis; divide via EUP recip.
    m = jnp.max(logits, axis=-1, keepdims=True)
    e = jnp.exp(logits - m)
    denom = jnp.sum(e, axis=-1, keepdims=True)
    out_ref[...] = (e * pl.reciprocal(denom, approx=True)).astype(out_ref.dtype)


def prepare_params(params):
    """One-time prep: weights -> bf16 (half the per-call weight DMA bytes),
    biases -> f32 row vectors (1, N). Call once outside the hot path."""
    prepped = {}
    for i in (1, 2, 3):
        prepped[f"w{i}"] = params[f"w{i}"].astype(jnp.bfloat16)
        prepped[f"b{i}"] = params[f"b{i}"].reshape(1, -1).astype(jnp.float32)
    return prepped


def _choose_batch_tile(B, F, H1, H2, O, max_tile):
    """Balanced, VMEM-aware batch tile (multiple of 8)."""
    b8 = _round_up(max(B, 1), 8)
    if b8 <= max_tile:
        tb = b8                                   # single tile, zero extra pad
    else:
        n_tiles = _cdiv(b8, max_tile)             # balanced tiles bound the
        tb = _round_up(_cdiv(b8, n_tiles), 8)     # padding waste to < 8 rows

    # Resident weight/bias bytes (bf16 weights, f32 biases), fetched once.
    weight_bytes = (F * H1 + H1 * H2 + H2 * O) * 2 + (H1 + H2 + O) * 4

    def footprint(t):
        x_db = 2 * t * F * 4          # double-buffered x tile (f32)
        out_db = 2 * t * O * 4        # double-buffered output tile (f32)
        interm = t * (H1 + H2 + O) * 4  # f32 intermediates inside the body
        return x_db + out_db + interm + weight_bytes

    # Stay well under v7x's 32 MiB default scoped VMEM (64 MiB physical);
    # v5e/v6e have more headroom, so this guard only ever shrinks for huge F.
    budget = 20 * 1024 * 1024
    while tb > 8 and footprint(tb) > budget:
        tb = _round_up(tb // 2, 8)
    return tb


def mlp_block(x, params, *, max_batch_tile=2048):
    """x: [B, F] float32. params: raw f32 dict (w*, b*) or prepare_params() output."""
    # Accept raw params, but only convert if they were not prepared already
    # (keeps the repeated f32->bf16 weight conversion out of the hot path).
    if params["w1"].dtype != jnp.bfloat16 or params["b1"].ndim != 2:
        params = prepare_params(params)
    w1, b1 = params["w1"], params["b1"]
    w2, b2 = params["w2"], params["b2"]
    w3, b3 = params["w3"], params["b3"]

    B, F = x.shape
    H1, H2, O = w1.shape[1], w2.shape[1], w3.shape[1]

    tb = _choose_batch_tile(B, F, H1, H2, O, max_batch_tile)
    padded_b = _round_up(B, tb)
    if padded_b != B:
        x = jnp.pad(x, ((0, padded_b - B), (0, 0)))
    grid = (padded_b // tb,)

    # Weights/biases: full-array block with a constant index -> fetched once,
    # VMEM-resident across all grid steps.
    def const(arr):
        nd = arr.ndim
        return pl.BlockSpec(arr.shape, lambda i, _nd=nd: (0,) * _nd)

    # Advisory cost estimate so XLA overlaps the kernel with surrounding ops.
    flops = 2 * padded_b * (F * H1 + H1 * H2 + H2 * O)
    transcendentals = padded_b * O                       # exp per logit
    bytes_accessed = (padded_b * (F + O) * 4             # x in, probs out
                      + (F * H1 + H1 * H2 + H2 * O) * 2  # bf16 weights
                      + (H1 + H2 + O) * 4)               # f32 biases
    cost = pl.CostEstimate(flops=flops,
                           transcendentals=transcendentals,
                           bytes_accessed=bytes_accessed)

    out = pl.pallas_call(
        mlp_block_kernel,
        out_shape=jax.ShapeDtypeStruct((padded_b, O), jnp.float32),
        grid=grid,
        in_specs=[
            pl.BlockSpec((tb, F), lambda i: (i, 0)),   # x: tiled over batch
            const(w1), const(b1),
            const(w2), const(b2),
            const(w3), const(b3),
        ],
        out_specs=pl.BlockSpec((tb, O), lambda i: (i, 0)),
        compiler_params=pltpu.CompilerParams(
            dimension_semantics=("parallel",),
        ),
        cost_estimate=cost,
    )(x, w1, b1, w2, b2, w3, b3)

    return out[:B]


def init_params(key, feature_dim, output_dim):
    """Deterministic init mimicking nn.Linear's uniform(-1/sqrt(fan_in), ...)."""
    dims = [(feature_dim, 256), (256, 128), (128, output_dim)]
    params = {}
    for i, (fan_in, fan_out) in enumerate(dims, start=1):
        key, kw, kb = jax.random.split(key, 3)
        bound = 1.0 / jnp.sqrt(fan_in)
        params[f"w{i}"] = jax.random.uniform(
            kw, (fan_in, fan_out), jnp.float32, -bound, bound)
        params[f"b{i}"] = jax.random.uniform(
            kb, (fan_out,), jnp.float32, -bound, bound)
    return params


def mlp_block_ref(x, params):
    """Pure-JAX f32 reference for correctness checking."""
    h = jnp.maximum(x @ params["w1"] + params["b1"], 0.0)
    h = jnp.maximum(h @ params["w2"] + params["b2"], 0.0)
    logits = h @ params["w3"] + params["b3"]
    return jax.nn.softmax(logits, axis=-1)


if __name__ == "__main__":
    feature_dim = 64
    output_dim = 16
    batch = 8

    key = jax.random.PRNGKey(0)
    key, kx = jax.random.split(key)
    x = jax.random.normal(kx, (batch, feature_dim), jnp.float32)
    params = init_params(key, feature_dim, output_dim)

    # One-time bf16 weight prep outside the hot path; reuse for every forward.
    prepped = prepare_params(params)

    out = mlp_block(x, prepped)
    out = jax.block_until_ready(out)

    ref = mlp_block_ref(x, params)
    assert out.shape == (batch, output_dim)
    # bf16 MXU operands + approx reciprocal -> relaxed tolerances vs f32 ref.
    assert jnp.allclose(out, ref, atol=3e-2, rtol=3e-2), "mismatch vs reference"
    assert jnp.allclose(jnp.sum(out, axis=-1), 1.0, atol=5e-3), \
        "softmax rows must sum to 1"

    print("KERNEL_OK")
</pallas_src>

<mosaic_0001>
module attributes {stable_mosaic.version = 11 : i64} {
  func.func @mlp_block_kernel(%arg0: i32, %arg1: memref<8x64xf32, #tpu.memory_space<vmem>>, %arg2: memref<64x256xbf16, #tpu.memory_space<vmem>>, %arg3: memref<1x256xf32, #tpu.memory_space<vmem>>, %arg4: memref<256x128xbf16, #tpu.memory_space<vmem>>, %arg5: memref<1x128xf32, #tpu.memory_space<vmem>>, %arg6: memref<128x16xbf16, #tpu.memory_space<vmem>>, %arg7: memref<1x16xf32, #tpu.memory_space<vmem>>, %arg8: memref<8x16xf32, #tpu.memory_space<vmem>>) attributes {dimension_semantics = [#tpu.dimension_semantics<parallel>], iteration_bounds = array<i64: 1>, scalar_prefetch = 0 : i64, scratch_operands = 0 : i64, tpu.core_type = #tpu.core_type<tc>, window_params = [{transform_indices = @transform_0, window_bounds = array<i64: 8, 64>}, {pipeline_mode = #tpu.pipeline_mode<synchronous>, transform_indices = @transform_1, window_bounds = array<i64: 64, 256>}, {pipeline_mode = #tpu.pipeline_mode<synchronous>, transform_indices = @transform_2, window_bounds = array<i64: 1, 256>}, {pipeline_mode = #tpu.pipeline_mode<synchronous>, transform_indices = @transform_3, window_bounds = array<i64: 256, 128>}, {pipeline_mode = #tpu.pipeline_mode<synchronous>, transform_indices = @transform_4, window_bounds = array<i64: 1, 128>}, {pipeline_mode = #tpu.pipeline_mode<synchronous>, transform_indices = @transform_5, window_bounds = array<i64: 128, 16>}, {pipeline_mode = #tpu.pipeline_mode<synchronous>, transform_indices = @transform_6, window_bounds = array<i64: 1, 16>}, {transform_indices = @transform_7, window_bounds = array<i64: 8, 16>}]} {
    %c0 = arith.constant 0 : index
    %c0_0 = arith.constant 0 : index
    %0 = vector.load %arg1[%c0, %c0_0] : memref<8x64xf32, #tpu.memory_space<vmem>>, vector<8x64xf32>
    %1 = arith.truncf %0 : vector<8x64xf32> to vector<8x64xbf16>
    %c0_1 = arith.constant 0 : index
    %c0_2 = arith.constant 0 : index
    %2 = vector.load %arg2[%c0_1, %c0_2] : memref<64x256xbf16, #tpu.memory_space<vmem>>, vector<64x256xbf16>
    %cst = arith.constant dense<0.000000e+00> : vector<8x256xf32>
    %3 = tpu.matmul %1, %2, %cst {dimension_numbers = #tpu.dot_dimension_numbers<[1], [0], [0], [1], [0, 0, 1, 1], [], []>} : vector<8x64xbf16>, vector<64x256xbf16>, vector<8x256xf32> -> vector<8x256xf32>
    %c0_3 = arith.constant 0 : index
    %c0_4 = arith.constant 0 : index
    %4 = vector.load %arg3[%c0_3, %c0_4] : memref<1x256xf32, #tpu.memory_space<vmem>>, vector<1x256xf32>
    %5 = vector.broadcast %4 : vector<1x256xf32> to vector<8x256xf32>
    %6 = arith.addf %3, %5 : vector<8x256xf32>
    %cst_5 = arith.constant 0.000000e+00 : f32
    %7 = vector.broadcast %cst_5 : f32 to vector<8x256xf32>
    %8 = arith.maximumf %6, %7 : vector<8x256xf32>
    %9 = arith.truncf %8 : vector<8x256xf32> to vector<8x256xbf16>
    %c0_6 = arith.constant 0 : index
    %c0_7 = arith.constant 0 : index
    %10 = vector.load %arg4[%c0_6, %c0_7] : memref<256x128xbf16, #tpu.memory_space<vmem>>, vector<256x128xbf16>
    %cst_8 = arith.constant dense<0.000000e+00> : vector<8x128xf32>
    %11 = tpu.matmul %9, %10, %cst_8 {dimension_numbers = #tpu.dot_dimension_numbers<[1], [0], [0], [1], [0, 0, 1, 1], [], []>} : vector<8x256xbf16>, vector<256x128xbf16>, vector<8x128xf32> -> vector<8x128xf32>
    %c0_9 = arith.constant 0 : index
    %c0_10 = arith.constant 0 : index
    %12 = vector.load %arg5[%c0_9, %c0_10] : memref<1x128xf32, #tpu.memory_space<vmem>>, vector<1x128xf32>
    %13 = vector.broadcast %12 : vector<1x128xf32> to vector<8x128xf32>
    %14 = arith.addf %11, %13 : vector<8x128xf32>
    %cst_11 = arith.constant 0.000000e+00 : f32
    %15 = vector.broadcast %cst_11 : f32 to vector<8x128xf32>
    %16 = arith.maximumf %14, %15 : vector<8x128xf32>
    %17 = arith.truncf %16 : vector<8x128xf32> to vector<8x128xbf16>
    %c0_12 = arith.constant 0 : index
    %c0_13 = arith.constant 0 : index
    %18 = vector.load %arg6[%c0_12, %c0_13] : memref<128x16xbf16, #tpu.memory_space<vmem>>, vector<128x16xbf16>
    %cst_14 = arith.constant dense<0.000000e+00> : vector<8x16xf32>
    %19 = tpu.matmul %17, %18, %cst_14 {dimension_numbers = #tpu.dot_dimension_numbers<[1], [0], [0], [1], [0, 0, 1, 1], [], []>} : vector<8x128xbf16>, vector<128x16xbf16>, vector<8x16xf32> -> vector<8x16xf32>
    %c0_15 = arith.constant 0 : index
    %c0_16 = arith.constant 0 : index
    %20 = vector.load %arg7[%c0_15, %c0_16] : memref<1x16xf32, #tpu.memory_space<vmem>>, vector<1x16xf32>
    %21 = vector.broadcast %20 : vector<1x16xf32> to vector<8x16xf32>
    %22 = arith.addf %19, %21 : vector<8x16xf32>
    %cst_17 = arith.constant dense<0xFF800000> : vector<8xf32>
    %23 = vector.multi_reduction <maximumf>, %22, %cst_17 [1] : vector<8x16xf32> to vector<8xf32>
    %24 = vector.shape_cast %23 : vector<8xf32> to vector<8x1xf32>
    %25 = vector.broadcast %24 : vector<8x1xf32> to vector<8x16xf32>
    %26 = arith.subf %22, %25 : vector<8x16xf32>
    %27 = math.exp %26 : vector<8x16xf32>
    %cst_18 = arith.constant dense<0.000000e+00> : vector<8xf32>
    %28 = vector.multi_reduction <add>, %27, %cst_18 [1] : vector<8x16xf32> to vector<8xf32>
    %29 = vector.shape_cast %28 : vector<8xf32> to vector<8x1xf32>
    %30 = tpu.reciprocal %29 {approx = true} : vector<8x1xf32> -> vector<8x1xf32>
    %31 = vector.broadcast %30 : vector<8x1xf32> to vector<8x16xf32>
    %32 = arith.mulf %27, %31 : vector<8x16xf32>
    %c0_19 = arith.constant 0 : index
    %c0_20 = arith.constant 0 : index
    %33 = vector.load %arg8[%c0_19, %c0_20] : memref<8x16xf32, #tpu.memory_space<vmem>>, vector<8x16xf32>
    tpu.vector_store %arg8[%c0_19, %c0_20], %32 {strides = array<i32>} : memref<8x16xf32, #tpu.memory_space<vmem>>, vector<8x16xf32>,
    return
  }
  func.func @transform_0(%arg0: i32) -> (i32, i32) {
    %c0_i32 = arith.constant 0 : i32
    %c0_i32_0 = arith.constant 0 : i32
    return %arg0, %c0_i32 : i32, i32
  }
  func.func @transform_1(%arg0: i32) -> (i32, i32) {
    %c0_i32 = arith.constant 0 : i32
    %c0_i32_0 = arith.constant 0 : i32
    %c0_i32_1 = arith.constant 0 : i32
    return %c0_i32, %c0_i32_0 : i32, i32
  }
  func.func @transform_2(%arg0: i32) -> (i32, i32) {
    %c0_i32 = arith.constant 0 : i32
    %c0_i32_0 = arith.constant 0 : i32
    %c0_i32_1 = arith.constant 0 : i32
    return %c0_i32, %c0_i32_0 : i32, i32
  }
  func.func @transform_3(%arg0: i32) -> (i32, i32) {
    %c0_i32 = arith.constant 0 : i32
    %c0_i32_0 = arith.constant 0 : i32
    %c0_i32_1 = arith.constant 0 : i32
    return %c0_i32, %c0_i32_0 : i32, i32
  }
  func.func @transform_4(%arg0: i32) -> (i32, i32) {
    %c0_i32 = arith.constant 0 : i32
    %c0_i32_0 = arith.constant 0 : i32
    %c0_i32_1 = arith.constant 0 : i32
    return %c0_i32, %c0_i32_0 : i32, i32
  }
  func.func @transform_5(%arg0: i32) -> (i32, i32) {
    %c0_i32 = arith.constant 0 : i32
    %c0_i32_0 = arith.constant 0 : i32
    %c0_i32_1 = arith.constant 0 : i32
    return %c0_i32, %c0_i32_0 : i32, i32
  }
  func.func @transform_6(%arg0: i32) -> (i32, i32) {
    %c0_i32 = arith.constant 0 : i32
    %c0_i32_0 = arith.constant 0 : i32
    %c0_i32_1 = arith.constant 0 : i32
    return %c0_i32, %c0_i32_0 : i32, i32
  }
  func.func @transform_7(%arg0: i32) -> (i32, i32) {
    %c0_i32 = arith.constant 0 : i32
    %c0_i32_0 = arith.constant 0 : i32
    return %arg0, %c0_i32 : i32, i32
  }
}

</mosaic_0001>

<bundles_post_ra>
// kernel: tpu_custom_call.1
= control target key start
LH: loop header
LB: loop body
LE: loop exit
PB: predicated region body
PF: predicated region fallthrough
CT: control target
= control target key end

     0   :  { %12 = vsyncpa [#allocation3], 0  ;;  %s811_s0 = inlined_call_operand.vmem [shape: f32[8,64], index: 0, kind: input, shape index: {}]   ;;  %s812_s1 = inlined_call_operand.vmem [shape: bf16[64,256], index: 1, kind: input, shape index: {}]   ;;  %s813_s2 = inlined_call_operand.hbm [shape: f32[1,256], index: 2, kind: input, shape index: {}]   ;;  %s814_s3 = inlined_call_operand.hbm [shape: bf16[256,128], index: 3, kind: input, shape index: {}]   ;;  %s815_s4 = inlined_call_operand.vmem [shape: f32[1,128], index: 4, kind: input, shape index: {}]   ;;  %s816_s5 = inlined_call_operand.vmem [shape: bf16[128,16], index: 5, kind: input, shape index: {}]   ;;  %s817_s6 = inlined_call_operand.vmem [shape: f32[1,16], index: 6, kind: input, shape index: {}]   ;;  %s818_s7 = inlined_call_operand.hbm [shape: f32[8,16], index: 7, kind: output, shape index: {}]  }
   0x1   :  { %13 = vsyncpa [#allocation6], 0 }
   0x2   :  { %14 = vsyncpa [#allocation4], 0  ;;  %s24_s26 = sshll.u32 %s813_s2, 4  ;;  %s671_s27 = smov [#allocation2]   ;;  %s25_s26 = int_to_ptr.hbm [resolvable:$true] %s24_s26 }
   0x3   :  { %s26_s28 = sshll.u32 %s671_s27, 4  ;;  %s34_s8 = sshll.u32 %s814_s3, 4  ;;  %s27_s28 = int_to_ptr.vmem [resolvable:$true] %s26_s28  ;;  %s35_s8 = int_to_ptr.hbm [resolvable:$true] %s34_s8 }
   0x4   :  { %29 = dma.hbm_to_vmem [thread:$0]  %s25_s26, 32, %s27_s28, [#allocation3]  }
   0x5   :  { %s672_s9 = smov [#allocation5]   ;;  %s673_s11 = smov 64  }
   0x6   :  { %s36_s10 = sshll.u32 %s672_s9, 4  ;;  %s674_s12 = smov 4   ;;  %s37_s10 = int_to_ptr.vmem [resolvable:$true] %s36_s10 }
   0x7   :  { %42 = dma.hbm_to_vmem [thread:$0]  %s35_s8, 2048, %s37_s10, [#allocation6], %s673_s11, %s673_s11, %s674_s12  }
   0x8   :  { %665 = dma.done.wait [#allocation3], 32  }
   0x9   :  { %666 = vsyncadd [#allocation3], 4294967264 }
   0xa   :  { %667 = dma.done.wait [#allocation6], 2048  }
   0xb   :  { %668 = vsyncadd [#allocation6], 4294965248  ;;  %v446_v0 = vld [vmem:[%s812_s1 + $0x30] sm:$0xf]  ;;  %v557_v1 = vld [vmem:[%s812_s1 + $0x34] sm:$0xf0] }
   0xc   :  { %v438_v2 = vld [vmem:[%s812_s1 + $0x20] sm:$0xf]  ;;  %v447_v3 = vor.u32 %v557_v1, %v446_v0  ;;  %v555_v4 = vld [vmem:[%s812_s1 + $0x24] sm:$0xf0]  ;;  %v430_v6 = vld [vmem:[%s812_s1 + $0x10] sm:$0xf] }
   0xd   :  { %v439_v5 = vor.u32 %v555_v4, %v438_v2  ;;  %v553_v7 = vld [vmem:[%s812_s1 + $0x14] sm:$0xf0]  ;;  %v422_v10 = vld [vmem:[%s812_s1] sm:$0xf]  ;;  %v551_v13 = vld [vmem:[%s812_s1 + $0x4] sm:$0xf0] }
   0xe   :  { %122 = vmatpush.bf16.msra.mxu1 %v447_v3  ;;  %v565_v8 = vld [vmem:[#allocation5 + $0x38] sm:$0xff]  ;;  %v431_v9 = vor.u32 %v553_v7, %v430_v6  ;;  %v564_v11 = vld [vmem:[#allocation5 + $0x30] sm:$0xff]  ;;  %v423_v17 = vor.u32 %v551_v13, %v422_v10  ;;  %v563_v19 = vld [vmem:[#allocation5 + $0x28] sm:$0xff]  ;;  %vm114_vm0 = vcmask 523264   ;;  %vm389_vm1 = vcmask 130048   ;;  %s409_s14 = sshll.u32 %s818_s7, 4  ;;  %s410_s14 = int_to_ptr.hbm [resolvable:$true] %s409_s14 }
   0xf   :  { %280 = vmatpush.bf16.msra.mxu2 %v565_v8  ;;  %v573_v12 = vld [vmem:[#allocation5 + $0x78] sm:$0xff]  ;;  %v556_v14 = vld [vmem:[%s812_s1 + $0x34] sm:$0xf]  ;;  %v554_v21 = vld [vmem:[%s812_s1 + $0x24] sm:$0xf] }
  0x10   :  { %v448_v15 = vld [vmem:[%s812_s1 + $0x38] sm:$0xf0]  ;;  %293 = vmatpush.bf16.msra.mxu3 %v573_v12  ;;  %v572_v16 = vld [vmem:[#allocation5 + $0x70] sm:$0xff]  ;;  %v58_v18 = vld [vmem:[%s811_s0] sm:$0xff] }
  0x11   :  { %v451_v20 = vor.u32 %v556_v14, %v448_v15  ;;  %v440_v22 = vld [vmem:[%s812_s1 + $0x28] sm:$0xf0]  ;;  %v59_v23 = vpack.c.bf16 %v58_v18, %v58_v18  ;;  %v562_v24 = vld [vmem:[#allocation5 + $0x20] sm:$0xff]  ;;  %v552_v26 = vld [vmem:[%s812_s1 + $0x14] sm:$0xf] }
  0x12   :  { %123 = vmatpush.bf16.msra.mxu1 %v439_v5  ;;  %v443_v25 = vor.u32 %v554_v21, %v440_v22  ;;  %v432_v27 = vld [vmem:[%s812_s1 + $0x18] sm:$0xf0]  ;;  %v550_v30 = vld [vmem:[%s812_s1 + $0x4] sm:$0xf]  ;;  %v424_v31 = vld [vmem:[%s812_s1 + $0x8] sm:$0xf0] }
  0x13   :  { %281 = vmatpush.bf16.msra.mxu2 %v564_v11  ;;  %v561_v28 = vld [vmem:[#allocation5 + $0x18] sm:$0xff]  ;;  %v435_v29 = vor.u32 %v552_v26, %v432_v27  ;;  %v560_v32 = vld [vmem:[#allocation5 + $0x10] sm:$0xff]  ;;  %v427_v33 = vor.u32 %v550_v30, %v424_v31  ;;  %v559_v34 = vld [vmem:[#allocation5 + $0x8] sm:$0xff] }
  0x14   :  { %294 = vmatpush.bf16.msra.mxu3 %v572_v16  ;;  %v571_v35 = vld [vmem:[#allocation5 + $0x68] sm:$0xff]  ;;  %v558_v36 = vld [vmem:[#allocation5] sm:$0xff]  ;;  %v569_v38 = vld [vmem:[#allocation5 + $0x58] sm:$0xff] }
  0x15   :  { %v570_v37 = vld [vmem:[#allocation5 + $0x60] sm:$0xff]  ;;  %v568_v39 = vld [vmem:[#allocation5 + $0x50] sm:$0xff]  ;;  %v567_v40 = vld [vmem:[#allocation5 + $0x48] sm:$0xff] }
  0x16   :  { %124 = vmatpush.bf16.msra.mxu1 %v431_v9  ;;  %v566_v41 = vld [vmem:[#allocation5 + $0x40] sm:$0xff]  ;;  %v581_v42 = vld [vmem:[%s816_s5 + $0x38] sm:$0xff]  ;;  %v68_v43 = vld [vmem:[#allocation2] sm:$0x3] }
  0x17   :  { %282 = vmatpush.bf16.msra.mxu2 %v563_v19  ;;  %376 = vmatpush.bf16.msra.mxu0 %v581_v42  ;;  %v580_v44 = vld [vmem:[%s816_s5 + $0x30] sm:$0xff]  ;;  %v70_v45 = vperm.slane %v68_v43, 0  ;;  %v71_v51 = vperm.slane %v68_v43, 1  ;;  %v579_v57 = vld [vmem:[%s816_s5 + $0x28] sm:$0xff]  ;;  %v578_v58 = vld [vmem:[%s816_s5 + $0x20] sm:$0xff] }
  0x18   :  { %295 = vmatpush.bf16.msra.mxu3 %v571_v35  ;;  %v577_v59 = vld [vmem:[%s816_s5 + $0x18] sm:$0xff]  ;;  %v576_v60 = vld [vmem:[%s816_s5 + $0x10] sm:$0xff]  ;;  %v575_v61 = vld [vmem:[%s816_s5 + $0x8] sm:$0xff] }
  0x19   :  { %v574_v62 = vld [vmem:[%s816_s5] sm:$0xff] }
  0x1a   :  { %125 = vmatpush.bf16.msra.mxu1 %v423_v17  ;;  %v587_v1 = vld [vmem:[%s815_s4] ss:$0 sm:$0xff]  ;;  %s675_s4 = smov [#allocation7]  }
  0x1b   :  { %283 = vmatpush.bf16.msra.mxu2 %v562_v24  ;;  %377 = vmatpush.bf16.msra.mxu0 %v580_v44  ;;  %v588_v8 = vld [vmem:[%s817_s6] ss:$0 sm:$0xff]  ;;  %s407_s5 = sshll.u32 %s675_s4, 4  ;;  %s408_s5 = int_to_ptr.vmem [resolvable:$true] %s407_s5 }
  0x1c   :  { %296 = vmatpush.bf16.msra.mxu3 %v570_v37 }
  0x1d   :  { %452 = vmatmul.msk.bf16.vlgmr.msra.gmra.mxu1 %vm114_vm0, %v59_v23 }
  0x1e   :  { %135 = vmatpush.bf16.msrb.mxu1 %v451_v20 }
  0x1f   :  { %284 = vmatpush.bf16.msra.mxu2 %v561_v28  ;;  %378 = vmatpush.bf16.msra.mxu0 %v579_v57 }
  0x20   :  { %297 = vmatpush.bf16.msra.mxu3 %v569_v38 }
  0x22   :  { %136 = vmatpush.bf16.msrb.mxu1 %v443_v25 }
  0x23   :  { %285 = vmatpush.bf16.msra.mxu2 %v560_v32  ;;  %379 = vmatpush.bf16.msra.mxu0 %v578_v58 }
  0x24   :  { %298 = vmatpush.bf16.msra.mxu3 %v568_v39 }
  0x26   :  { %137 = vmatpush.bf16.msrb.mxu1 %v435_v29 }
  0x27   :  { %286 = vmatpush.bf16.msra.mxu2 %v559_v34  ;;  %380 = vmatpush.bf16.msra.mxu0 %v577_v59 }
  0x28   :  { %299 = vmatpush.bf16.msra.mxu3 %v567_v40 }
  0x2a   :  { %138 = vmatpush.bf16.msrb.mxu1 %v427_v33 }
  0x2b   :  { %287 = vmatpush.bf16.msra.mxu2 %v558_v36  ;;  %381 = vmatpush.bf16.msra.mxu0 %v576_v60 }
  0x2c   :  { %300 = vmatpush.bf16.msra.mxu3 %v566_v41 }
  0x2d   :  { %453 = vmatmul.msk.bf16.vlgmr.msrb.gmra.mxu1 %vm114_vm0, %v59_v23 }
  0x2f   :  { %382 = vmatpush.bf16.msra.mxu0 %v575_v61 }
  0x33   :  { %383 = vmatpush.bf16.msra.mxu0 %v574_v62 }
  0x9a   :  { %v127_v46 = vpop.f32.mrf.mxu1 }
  0x9b   :  { %v128_v47 = vadd.f32 %v127_v46, %v70_v45 }
  0x9d   :  { %v144_v48 = vmax.f32 %v128_v47, 0.0 }
  0x9f   :  { %v146_v49 = vpack.c.bf16 %v144_v48, %v144_v48 }
  0xa1   :  { %288 = vmatmul.bf16.vlgmr.msra.gmra.mxu2 %v146_v49 }
  0xa2   :  { %v129_v50 = vpop.f32.mrf.mxu1 }
  0xaa   :  { %v140_v52 = vpop.f32.mrf.mxu1 }
  0xab   :  { %v141_v53 = vadd.f32 %v140_v52, %v71_v51 }
  0xad   :  { %v145_v54 = vmax.f32 %v141_v53, 0.0 }
  0xaf   :  { %v147_v55 = vpack.c.bf16 %v145_v54, %v145_v54 }
  0xb1   :  { %301 = vmatmul.bf16.vlgmr.msra.gmra.mxu3 %v147_v55 }
  0xb2   :  { %v142_v56 = vpop.f32.mrf.mxu1 }
 0x124   :  { %v289_v63 = vpop.f32.mrf.mxu2 }
 0x125   :  { %v290_v2 = vadd.f32 %v587_v1, %v289_v63 }
 0x12c   :  { %v291_v0 = vpop.f32.mrf.mxu2 }
 0x134   :  { %v302_v3 = vpop.f32.mrf.mxu3 }
 0x135   :  { %v303_v4 = vadd.f32 %v302_v3, %v290_v2 }
 0x137   :  { %v306_v5 = vmax.f32 %v303_v4, 0.0 }
 0x139   :  { %v307_v6 = vpack.c.bf16 %v306_v5, %v306_v5 }
 0x13b   :  { %384 = vmatmul.bf16.vlgmr.msra.gmra.mxu0 %v307_v6 }
 0x13c   :  { %v304_v7 = vpop.f32.mrf.mxu3 }
 0x1b8   :  { %v385_v9 = vpop.f32.mrf.mxu0 }
 0x1b9   :  { %v386_v10 = vadd.f32 %v588_v8, %v385_v9 }
 0x1bb   :  { %v390_v11 = vsel %vm389_vm1, %v386_v10, -inf }
 0x1bc   :  { %391 = vmax.xlane.f32.xlu0 %v390_v11 }
 0x1c0   :  { %v387_v12 = vpop.f32.mrf.mxu0 }
 0x22f   :  { %v392_v13 = vpop.xlane.xlu0 %391 }
 0x230   :  { %v393_v14 = vsub.f32 %v386_v10, %v392_v13 }
 0x232   :  { %v394_v15 = vmul.f32 1.442695, %v393_v14 }
 0x234   :  { %589 = vpow2.f32 %v394_v15 }
 0x23a   :  { %v590_v16 = vpop.eup %589 }
 0x23b   :  { %v396_v17 = vsel %vm389_vm1, %v590_v16, 0.0 }
 0x23c   :  { %397 = vadd.xlane.f32.xlu0 %v396_v17 }
 0x2af   :  { %v398_v18 = vpop.xlane.xlu0 %397 }
 0x2b0   :  { %591 = vrcp.f32 %v398_v18 }
 0x2b6   :  { %v592_v19 = vpop.eup %591 }
 0x2b7   :  { %v400_v20 = vmul.f32 %v592_v19, %v590_v16 }
 0x2b9   :  { %401 = vst.msk [vmem:[#allocation7] sm:$0xff] %vm389_vm1, %v400_v20 }
 0x2ba   :  { %412 = dma.vmem_to_hbm [thread:$0]  %s408_s5, 128, %s410_s14, [#allocation4]  }
 0x2bb   :  { %669 = dma.done.wait [#allocation4], 128  }
 0x2bc   :  { %670 = vsyncadd [#allocation4], 4294967168 }
 0x2bd   :  { %417 = vsyncpa [#allocation3], 1 }
 0x2be   :  { %418 = vsyncpa [#allocation6], 1 }
 0x2bf   :  { %419 = vsyncpa [#allocation4], 1 }

</bundles_post_ra>
